<compile_context>
chip_gen: v5e
topology: v5e:2x2
jax: 0.10.0
libtpu: 0.0.40
codegen_flags: <defaults>
</compile_context>

<pallas_src>
import jax
import jax.numpy as jnp
from jax.experimental import pallas as pl
from jax.experimental.pallas import tpu as pltpu


def dqn_kernel(xT_ref, w1_ref, b1_ref, w2_ref, b2_ref, w3_ref, b3_ref, o_ref):
    # xT_ref: (in_dim, TB)   activations are (features, batch) -> lane-dense
    xT = xT_ref[...]
    w1 = w1_ref[...]                       # (32, in_dim), in_dim is tiny (2)

    # ---- layer 1: K=in_dim contraction done on the VPU as broadcast FMAs ----
    h1 = w1[:, 0:1] * xT[0:1, :] + b1_ref[...]          # (32, TB)
    for k in range(1, w1.shape[1]):                      # static unroll (in_dim=2)
        h1 = h1 + w1[:, k:k + 1] * xT[k:k + 1, :]
    h1 = jnp.maximum(h1, 0.0)

    # ---- layer 2: (32,32) @ (32,TB) on the MXU ----
    h2 = jnp.dot(w2_ref[...], h1, preferred_element_type=jnp.float32) + b2_ref[...]
    h2 = jnp.maximum(h2, 0.0)

    # ---- layer 3: (out,32) @ (32,TB) on the MXU, lane-dense (out, TB) store ----
    out = jnp.dot(w3_ref[...], h2, preferred_element_type=jnp.float32) + b3_ref[...]
    o_ref[...] = out.astype(o_ref.dtype)


def dqn_forward(x, params, tb=512):
    """x: (B, input_dim) float32. params: PyTorch-layout weights/biases.

    Returns (B, output_dim) float32, matching nn.Linear semantics y = x @ W^T + b.
    """
    B, in_dim = x.shape
    hidden = params["w1"].shape[0]
    out_dim = params["w3"].shape[0]

    # Lane-dense tile of the batch axis: multiple of 128, capped by request.
    tb = min(tb, max(128, pl.cdiv(B, 128) * 128))
    B_pad = pl.cdiv(B, tb) * tb
    nt = B_pad // tb

    # Transpose to (features, batch) so batch lands on the lane axis; pad batch.
    xT = jnp.pad(x, ((0, B_pad - B), (0, 0))).T          # (in_dim, B_pad)

    cost = pl.CostEstimate(
        flops=2 * B_pad * (in_dim * hidden + hidden * hidden + hidden * out_dim),
        transcendentals=0,
        bytes_accessed=4 * (B_pad * (in_dim + out_dim)
                            + in_dim * hidden + hidden * hidden + hidden * out_dim
                            + 2 * hidden + out_dim),
    )

    const = lambda i: (0, 0)  # weights/biases stay resident across all grid steps

    out_T = pl.pallas_call(
        dqn_kernel,
        out_shape=jax.ShapeDtypeStruct((out_dim, B_pad), jnp.float32),
        grid_spec=pltpu.PrefetchScalarGridSpec(
            num_scalar_prefetch=0,
            grid=(nt,),
            in_specs=[
                pl.BlockSpec((in_dim, tb), lambda i: (0, i)),   # xT batch tile
                pl.BlockSpec((hidden, in_dim), const),          # w1
                pl.BlockSpec((hidden, 1), const),               # b1
                pl.BlockSpec((hidden, hidden), const),          # w2
                pl.BlockSpec((hidden, 1), const),               # b2
                pl.BlockSpec((out_dim, hidden), const),         # w3
                pl.BlockSpec((out_dim, 1), const),              # b3
            ],
            out_specs=pl.BlockSpec((out_dim, tb), lambda i: (0, i)),
        ),
        compiler_params=pltpu.CompilerParams(
            dimension_semantics=("parallel",)),                 # 2 TCs on v7x
        cost_estimate=cost,
    )(xT, params["w1"], params["b1"], params["w2"], params["b2"],
      params["w3"], params["b3"])

    # Back to the caller-facing (B, out_dim) layout, dropping batch padding.
    return out_T.T[:B]


def init_params(key, input_dim=2, hidden=32, output_dim=4):
    """PyTorch nn.Linear default init (uniform +-1/sqrt(fan_in)), PyTorch layout."""
    keys = jax.random.split(key, 6)

    def linear(kw, kb, fan_in, fan_out):
        bound = 1.0 / jnp.sqrt(jnp.float32(fan_in))
        w = jax.random.uniform(kw, (fan_out, fan_in), jnp.float32, -bound, bound)
        b = jax.random.uniform(kb, (fan_out, 1), jnp.float32, -bound, bound)
        return w, b

    w1, b1 = linear(keys[0], keys[1], input_dim, hidden)
    w2, b2 = linear(keys[2], keys[3], hidden, hidden)
    w3, b3 = linear(keys[4], keys[5], hidden, output_dim)
    return {"w1": w1, "b1": b1, "w2": w2, "b2": b2, "w3": w3, "b3": b3}


def reference_forward(x, p):
    h1 = jnp.maximum(x @ p["w1"].T + p["b1"].T, 0.0)
    h2 = jnp.maximum(h1 @ p["w2"].T + p["b2"].T, 0.0)
    return h2 @ p["w3"].T + p["b3"].T


if __name__ == "__main__":
    key = jax.random.PRNGKey(0)
    k_params, k_x1, k_x2 = jax.random.split(key, 3)

    input_dim, hidden, output_dim = 2, 32, 4
    params = init_params(k_params, input_dim, hidden, output_dim)

    # Small single-tile case (batch gets padded to one lane-dense 128 tile).
    batch = 8
    x = jax.random.normal(k_x1, (batch, input_dim), jnp.float32)
    out = jax.block_until_ready(dqn_forward(x, params))
    ref = reference_forward(x, params)
    assert out.shape == (batch, output_dim)
    assert jnp.allclose(out, ref, atol=1e-5, rtol=1e-5), "mismatch vs reference (B=8)"

    # Multi-tile case exercising the grid + batch padding path.
    batch2 = 300
    x2 = jax.random.normal(k_x2, (batch2, input_dim), jnp.float32)
    out2 = jax.block_until_ready(dqn_forward(x2, params, tb=128))
    ref2 = reference_forward(x2, params)
    assert out2.shape == (batch2, output_dim)
    assert jnp.allclose(out2, ref2, atol=1e-5, rtol=1e-5), "mismatch vs reference (B=300)"

    print("KERNEL_OK")
</pallas_src>

<mosaic_0001>
module attributes {stable_mosaic.version = 11 : i64} {
  func.func @dqn_kernel(%arg0: i32, %arg1: memref<2x128xf32, #tpu.memory_space<vmem>>, %arg2: memref<32x2xf32, #tpu.memory_space<vmem>>, %arg3: memref<32x1xf32, #tpu.memory_space<vmem>>, %arg4: memref<32x32xf32, #tpu.memory_space<vmem>>, %arg5: memref<32x1xf32, #tpu.memory_space<vmem>>, %arg6: memref<4x32xf32, #tpu.memory_space<vmem>>, %arg7: memref<4x1xf32, #tpu.memory_space<vmem>>, %arg8: memref<4x128xf32, #tpu.memory_space<vmem>>) attributes {dimension_semantics = [#tpu.dimension_semantics<parallel>], iteration_bounds = array<i64: 1>, scalar_prefetch = 0 : i64, scratch_operands = 0 : i64, tpu.core_type = #tpu.core_type<tc>, window_params = [{transform_indices = @transform_0, window_bounds = array<i64: 2, 128>}, {pipeline_mode = #tpu.pipeline_mode<synchronous>, transform_indices = @transform_1, window_bounds = array<i64: 32, 2>}, {pipeline_mode = #tpu.pipeline_mode<synchronous>, transform_indices = @transform_2, window_bounds = array<i64: 32, 1>}, {pipeline_mode = #tpu.pipeline_mode<synchronous>, transform_indices = @transform_3, window_bounds = array<i64: 32, 32>}, {pipeline_mode = #tpu.pipeline_mode<synchronous>, transform_indices = @transform_4, window_bounds = array<i64: 32, 1>}, {pipeline_mode = #tpu.pipeline_mode<synchronous>, transform_indices = @transform_5, window_bounds = array<i64: 4, 32>}, {pipeline_mode = #tpu.pipeline_mode<synchronous>, transform_indices = @transform_6, window_bounds = array<i64: 4, 1>}, {transform_indices = @transform_7, window_bounds = array<i64: 4, 128>}]} {
    %c0 = arith.constant 0 : index
    %c0_0 = arith.constant 0 : index
    %0 = vector.load %arg1[%c0, %c0_0] : memref<2x128xf32, #tpu.memory_space<vmem>>, vector<2x128xf32>
    %c0_1 = arith.constant 0 : index
    %c0_2 = arith.constant 0 : index
    %1 = vector.load %arg2[%c0_1, %c0_2] : memref<32x2xf32, #tpu.memory_space<vmem>>, vector<32x2xf32>
    %2 = vector.extract_strided_slice %1 {offsets = [0, 0], sizes = [32, 1], strides = [1, 1]} : vector<32x2xf32> to vector<32x1xf32>
    %3 = vector.extract_strided_slice %0 {offsets = [0, 0], sizes = [1, 128], strides = [1, 1]} : vector<2x128xf32> to vector<1x128xf32>
    %4 = vector.broadcast %2 : vector<32x1xf32> to vector<32x128xf32>
    %5 = vector.broadcast %3 : vector<1x128xf32> to vector<32x128xf32>
    %6 = arith.mulf %4, %5 : vector<32x128xf32>
    %c0_3 = arith.constant 0 : index
    %c0_4 = arith.constant 0 : index
    %7 = vector.load %arg3[%c0_3, %c0_4] : memref<32x1xf32, #tpu.memory_space<vmem>>, vector<32x1xf32>
    %8 = vector.broadcast %7 : vector<32x1xf32> to vector<32x128xf32>
    %9 = arith.addf %6, %8 : vector<32x128xf32>
    %10 = vector.extract_strided_slice %1 {offsets = [0, 1], sizes = [32, 1], strides = [1, 1]} : vector<32x2xf32> to vector<32x1xf32>
    %11 = vector.extract_strided_slice %0 {offsets = [1, 0], sizes = [1, 128], strides = [1, 1]} : vector<2x128xf32> to vector<1x128xf32>
    %12 = vector.broadcast %10 : vector<32x1xf32> to vector<32x128xf32>
    %13 = vector.broadcast %11 : vector<1x128xf32> to vector<32x128xf32>
    %14 = arith.mulf %12, %13 : vector<32x128xf32>
    %15 = arith.addf %9, %14 : vector<32x128xf32>
    %cst = arith.constant 0.000000e+00 : f32
    %16 = vector.broadcast %cst : f32 to vector<32x128xf32>
    %17 = arith.maximumf %15, %16 : vector<32x128xf32>
    %c0_5 = arith.constant 0 : index
    %c0_6 = arith.constant 0 : index
    %18 = vector.load %arg4[%c0_5, %c0_6] : memref<32x32xf32, #tpu.memory_space<vmem>>, vector<32x32xf32>
    %cst_7 = arith.constant dense<0.000000e+00> : vector<32x128xf32>
    %19 = tpu.matmul %18, %17, %cst_7 {dimension_numbers = #tpu.dot_dimension_numbers<[1], [0], [0], [1], [0, 0, 1, 1], [], []>} : vector<32x32xf32>, vector<32x128xf32>, vector<32x128xf32> -> vector<32x128xf32>
    %c0_8 = arith.constant 0 : index
    %c0_9 = arith.constant 0 : index
    %20 = vector.load %arg5[%c0_8, %c0_9] : memref<32x1xf32, #tpu.memory_space<vmem>>, vector<32x1xf32>
    %21 = vector.broadcast %20 : vector<32x1xf32> to vector<32x128xf32>
    %22 = arith.addf %19, %21 : vector<32x128xf32>
    %cst_10 = arith.constant 0.000000e+00 : f32
    %23 = vector.broadcast %cst_10 : f32 to vector<32x128xf32>
    %24 = arith.maximumf %22, %23 : vector<32x128xf32>
    %c0_11 = arith.constant 0 : index
    %c0_12 = arith.constant 0 : index
    %25 = vector.load %arg6[%c0_11, %c0_12] : memref<4x32xf32, #tpu.memory_space<vmem>>, vector<4x32xf32>
    %cst_13 = arith.constant dense<0.000000e+00> : vector<4x128xf32>
    %26 = tpu.matmul %25, %24, %cst_13 {dimension_numbers = #tpu.dot_dimension_numbers<[1], [0], [0], [1], [0, 0, 1, 1], [], []>} : vector<4x32xf32>, vector<32x128xf32>, vector<4x128xf32> -> vector<4x128xf32>
    %c0_14 = arith.constant 0 : index
    %c0_15 = arith.constant 0 : index
    %27 = vector.load %arg7[%c0_14, %c0_15] : memref<4x1xf32, #tpu.memory_space<vmem>>, vector<4x1xf32>
    %28 = vector.broadcast %27 : vector<4x1xf32> to vector<4x128xf32>
    %29 = arith.addf %26, %28 : vector<4x128xf32>
    %c0_16 = arith.constant 0 : index
    %c0_17 = arith.constant 0 : index
    %30 = vector.load %arg8[%c0_16, %c0_17] : memref<4x128xf32, #tpu.memory_space<vmem>>, vector<4x128xf32>
    tpu.vector_store %arg8[%c0_16, %c0_17], %29 {strides = array<i32>} : memref<4x128xf32, #tpu.memory_space<vmem>>, vector<4x128xf32>,
    return
  }
  func.func @transform_0(%arg0: i32) -> (i32, i32) {
    %c0_i32 = arith.constant 0 : i32
    %c0_i32_0 = arith.constant 0 : i32
    return %c0_i32, %arg0 : i32, i32
  }
  func.func @transform_1(%arg0: i32) -> (i32, i32) {
    %c0_i32 = arith.constant 0 : i32
    %c0_i32_0 = arith.constant 0 : i32
    %c0_i32_1 = arith.constant 0 : i32
    return %c0_i32, %c0_i32_0 : i32, i32
  }
  func.func @transform_2(%arg0: i32) -> (i32, i32) {
    %c0_i32 = arith.constant 0 : i32
    %c0_i32_0 = arith.constant 0 : i32
    %c0_i32_1 = arith.constant 0 : i32
    return %c0_i32, %c0_i32_0 : i32, i32
  }
  func.func @transform_3(%arg0: i32) -> (i32, i32) {
    %c0_i32 = arith.constant 0 : i32
    %c0_i32_0 = arith.constant 0 : i32
    %c0_i32_1 = arith.constant 0 : i32
    return %c0_i32, %c0_i32_0 : i32, i32
  }
  func.func @transform_4(%arg0: i32) -> (i32, i32) {
    %c0_i32 = arith.constant 0 : i32
    %c0_i32_0 = arith.constant 0 : i32
    %c0_i32_1 = arith.constant 0 : i32
    return %c0_i32, %c0_i32_0 : i32, i32
  }
  func.func @transform_5(%arg0: i32) -> (i32, i32) {
    %c0_i32 = arith.constant 0 : i32
    %c0_i32_0 = arith.constant 0 : i32
    %c0_i32_1 = arith.constant 0 : i32
    return %c0_i32, %c0_i32_0 : i32, i32
  }
  func.func @transform_6(%arg0: i32) -> (i32, i32) {
    %c0_i32 = arith.constant 0 : i32
    %c0_i32_0 = arith.constant 0 : i32
    %c0_i32_1 = arith.constant 0 : i32
    return %c0_i32, %c0_i32_0 : i32, i32
  }
  func.func @transform_7(%arg0: i32) -> (i32, i32) {
    %c0_i32 = arith.constant 0 : i32
    %c0_i32_0 = arith.constant 0 : i32
    return %c0_i32, %arg0 : i32, i32
  }
}

</mosaic_0001>

<bundles_post_ra>
// kernel: tpu_custom_call.1
= control target key start
LH: loop header
LB: loop body
LE: loop exit
PB: predicated region body
PF: predicated region fallthrough
CT: control target
= control target key end

     0   :  { %v286_v3 = vmov 0   ;;  %s394_s0 = inlined_call_operand.vmem [shape: f32[2,128], index: 0, kind: input, shape index: {}]   ;;  %s395_s1 = inlined_call_operand.vmem [shape: f32[32,2], index: 1, kind: input, shape index: {}]   ;;  %s396_s2 = inlined_call_operand.vmem [shape: f32[32,1], index: 2, kind: input, shape index: {}]   ;;  %s397_s3 = inlined_call_operand.vmem [shape: f32[32,32], index: 3, kind: input, shape index: {}]   ;;  %s398_s4 = inlined_call_operand.vmem [shape: f32[32,1], index: 4, kind: input, shape index: {}]   ;;  %s399_s5 = inlined_call_operand.vmem [shape: f32[4,32], index: 5, kind: input, shape index: {}]   ;;  %s400_s6 = inlined_call_operand.vmem [shape: f32[4,1], index: 6, kind: input, shape index: {}]   ;;  %s401_s7 = inlined_call_operand.hbm [shape: f32[4,128], index: 7, kind: output, shape index: {}]  }
   0x1   :  { %v60_v0 = vld [vmem:[%s396_s2 + $0x18] sm:$0xff]  ;;  %v29_v2 = vld [vmem:[%s395_s1 + $0x8] sm:$0xff]  ;;  %254 = vset.pattern.permute.xlu2 %v286_v3  ;;  %252 = vset.pattern.permute.xlu1 %v286_v3 }
   0x2   :  { %v31_v1 = vld [vmem:[%s395_s1 + $0x18] sm:$0xff]  ;;  %251 = vset.pattern.permute.xlu0 %v286_v3  ;;  %78 = vperm.xlu1 %252, %v60_v0  }
   0x3   :  { %49 = vperm.xlu0 %251, %v31_v1   ;;  %39 = vperm.xlu2 %254, %v29_v2  }
   0x4   :  { %12 = vsyncpa [#allocation3], 0  ;;  %v30_v4 = vld [vmem:[%s395_s1 + $0x10] sm:$0xff]  ;;  %v287_v6 = vmov 1   ;;  %v58_v7 = vld [vmem:[%s396_s2 + $0x8] sm:$0xff]  ;;  %vm142_vm0 = vcmask 261120  }
   0x5   :  { %v59_v5 = vld [vmem:[%s396_s2 + $0x10] sm:$0xff]  ;;  %v28_v8 = vld [vmem:[%s395_s1] sm:$0xff]  ;;  %v121_v27 = vld [vmem:[%s398_s4 + $0x18] sm:$0xff]  ;;  %s288_s10 = smov [#allocation2]   ;;  %s226_s14 = sshll.u32 %s401_s7, 4  ;;  %s227_s14 = int_to_ptr.hbm [resolvable:$true] %s226_s14 }
   0x6   :  { %v57_v9 = vld [vmem:[%s396_s2] sm:$0xff]  ;;  %v120_v10 = vld [vmem:[%s398_s4 + $0x10] sm:$0xff]  ;;  %v119_v28 = vld [vmem:[%s398_s4 + $0x8] sm:$0xff]  ;;  %s224_s11 = sshll.u32 %s288_s10, 4  ;;  %s225_s11 = int_to_ptr.vmem [resolvable:$true] %s224_s11 }
   0x7   :  { %v189_v11 = vld [vmem:[%s400_s6] sm:$0xf]  ;;  %v116_v51 = vld [vmem:[%s397_s3 + $0x10] sm:$0xff]  ;;  %v115_v52 = vld [vmem:[%s397_s3 + $0x8] sm:$0xff] }
   0x8   :  { %v27_v13 = vld [vmem:[%s394_s0] sm:$0x3]  ;;  %v117_v53 = vld [vmem:[%s397_s3 + $0x18] sm:$0xff] }
   0x9   :  { %v52_v16 = vperm.slane %v27_v13, 0  ;;  %v101_v18 = vperm.slane %v27_v13, 1  ;;  %v118_v35 = vld [vmem:[%s398_s4] sm:$0xff] }
   0xa   :  { %253 = vset.pattern.permute.xlu1 %v287_v6  ;;  %v114_v50 = vld [vmem:[%s397_s3] sm:$0xff] }
   0xb   :  { %44 = vperm.xlu0 %251, %v30_v4   ;;  %73 = vperm.xlu2 %254, %v59_v5  }
   0xc   :  { %98 = vperm.xlu1 %253, %v31_v1  }
  0x13   :  { %255 = vset.pattern.permute.xlu0 %v287_v6  ;;  %68 = vperm.xlu2 %254, %v58_v7  }
  0x14   :  { %256 = vset.pattern.permute.xlu1 %v286_v3  ;;  %94 = vperm.xlu0 %255, %v30_v4  }
  0x15   :  { %34 = vperm.xlu1 %256, %v28_v8  }
  0x1b   :  { %63 = vperm.xlu2 %254, %v57_v9  }
  0x1c   :  { %86 = vperm.xlu0 %255, %v28_v8  }
  0x1d   :  { %257 = vset.pattern.permute.xlu1 %v287_v6  ;;  %v188_v6 = vld [vmem:[%s399_s5] sm:$0xf] }
  0x1e   :  { %90 = vperm.xlu1 %257, %v29_v2  }
  0x23   :  { %134 = vperm.xlu2 %254, %v120_v10  }
  0x24   :  { %259 = vset.pattern.permute.xlu0 %v286_v3 }
  0x25   :  { %129 = vperm.xlu0 %259, %v119_v28  }
  0x26   :  { %258 = vset.pattern.permute.xlu1 %v286_v3 }
  0x27   :  { %139 = vperm.xlu1 %258, %v121_v27  }
  0x2b   :  { %192 = vperm.xlu2 %254, %v189_v11  }
  0x2f   :  { %124 = vperm.xlu1 %258, %v118_v35  }
  0x5d   :  { %v40_v12 = vpop.permute.xlu2 %39 }
  0x5e   :  { %v54_v37 = vmul.f32 %v52_v16, %v40_v12 }
  0x65   :  { %v74_v19 = vpop.permute.xlu2 %73 }
  0x6d   :  { %v69_v29 = vpop.permute.xlu2 %68 }
  0x6e   :  { %v82_v43 = vadd.f32 %v69_v29, %v54_v37 }
  0x74   :  { %v79_v14 = vpop.permute.xlu1 %78 }
  0x75   :  { %v50_v15 = vpop.permute.xlu0 %49  ;;  %v64_v41 = vpop.permute.xlu2 %63 }
  0x76   :  { %v56_v17 = vmul.f32 %v52_v16, %v50_v15 }
  0x78   :  { %v84_v22 = vadd.f32 %v79_v14, %v56_v17 }
  0x7d   :  { %v45_v20 = vpop.permute.xlu0 %44  ;;  %v135_v58 = vpop.permute.xlu2 %134 }
  0x7e   :  { %v99_v21 = vpop.permute.xlu1 %98  ;;  %v55_v25 = vmul.f32 %v52_v16, %v45_v20 }
  0x7f   :  { %v105_v23 = vmul.f32 %v101_v18, %v99_v21 }
  0x80   :  { %v83_v31 = vadd.f32 %v74_v19, %v55_v25 }
  0x81   :  { %v109_v24 = vadd.f32 %v105_v23, %v84_v22 }
  0x83   :  { %v113_v26 = vmax.f32 %v109_v24, 0.0 }
  0x85   :  { %167 = vmatpush.msra.mxu0 %v113_v26  ;;  %240 = vmatpush.msra.mxu2 %v113_v26  ;;  %v193_v7 = vpop.permute.xlu2 %192 }
  0x86   :  { %241 = vmatpush.msra.mxu3 %v113_v26  ;;  %v95_v30 = vpop.permute.xlu0 %94 }
  0x87   :  { %v104_v32 = vmul.f32 %v101_v18, %v95_v30  ;;  %v35_v33 = vpop.permute.xlu1 %34 }
  0x88   :  { %v53_v38 = vmul.f32 %v52_v16, %v35_v33 }
  0x89   :  { %v108_v34 = vadd.f32 %v104_v32, %v83_v31 }
  0x8a   :  { %v81_v44 = vadd.f32 %v64_v41, %v53_v38 }
  0x8b   :  { %v112_v36 = vmax.f32 %v108_v34, 0.0 }
  0x8d   :  { %168 = vmatpush.msra.mxu0 %v112_v36  ;;  %242 = vmatpush.msra.mxu2 %v112_v36 }
  0x8e   :  { %243 = vmatpush.msra.mxu3 %v112_v36  ;;  %v87_v39 = vpop.permute.xlu0 %86 }
  0x8f   :  { %v102_v40 = vmul.f32 %v101_v18, %v87_v39 }
  0x90   :  { %v91_v42 = vpop.permute.xlu1 %90 }
  0x91   :  { %v103_v45 = vmul.f32 %v101_v18, %v91_v42  ;;  %v106_v46 = vadd.f32 %v102_v40, %v81_v44 }
  0x93   :  { %v107_v47 = vadd.f32 %v103_v45, %v82_v43  ;;  %v110_v49 = vmax.f32 %v106_v46, 0.0 }
  0x95   :  { %v111_v48 = vmax.f32 %v107_v47, 0.0 }
  0x97   :  { %169 = vmatpush.msra.mxu0 %v111_v48  ;;  %244 = vmatpush.msra.mxu2 %v111_v48  ;;  %v130_v56 = vpop.permute.xlu0 %129 }
  0x98   :  { %245 = vmatpush.msra.mxu3 %v111_v48 }
  0x99   :  { %170 = vmatpush.msra.mxu0 %v110_v49  ;;  %246 = vmatpush.msra.mxu2 %v110_v49  ;;  %v140_v54 = vpop.permute.xlu1 %139 }
  0x9a   :  { %247 = vmatpush.msra.mxu3 %v110_v49  ;;  %235 = vmatmul.msk.f32.vlgmr.msra.gmra.mxu0 %vm142_vm0, %v114_v50 }
  0x9b   :  { %237 = vmatmul.msk.f32.vlgmr.msra.gmra.mxu3 %vm142_vm0, %v116_v51  ;;  %236 = vmatmul.msk.f32.vlgmr.msra.gmra.mxu2 %vm142_vm0, %v115_v52 }
  0xa1   :  { %v125_v63 = vpop.permute.xlu1 %124 }
  0xa3   :  { %238 = vmatmul.msk.f32.gmra.mxu3 %vm142_vm0, %v117_v53 }
 0x117   :  { %v172_v0 = vpop.f32.mrf.mxu0 }
 0x118   :  { %v173_v3 = vadd.f32 %v172_v0, %v125_v63 }
 0x11a   :  { %v184_v5 = vmax.f32 %v173_v3, 0.0 }
 0x11e   :  { %v178_v55 = vpop.f32.mrf.mxu3  ;;  %v175_v57 = vpop.f32.mrf.mxu2 }
 0x11f   :  { %v179_v60 = vadd.f32 %v178_v55, %v135_v58  ;;  %v176_v61 = vadd.f32 %v175_v57, %v130_v56 }
 0x121   :  { %v186_v2 = vmax.f32 %v179_v60, 0.0  ;;  %v185_v4 = vmax.f32 %v176_v61, 0.0 }
 0x126   :  { %v181_v59 = vpop.f32.mrf.mxu3 }
 0x127   :  { %v182_v62 = vadd.f32 %v181_v59, %v140_v54 }
 0x129   :  { %v187_v1 = vmax.f32 %v182_v62, 0.0 }
 0x12b   :  { %210 = vmatpush.msra.mxu1 %v187_v1 }
 0x12d   :  { %211 = vmatpush.msra.mxu1 %v186_v2 }
 0x12f   :  { %212 = vmatpush.msra.mxu1 %v185_v4 }
 0x131   :  { %213 = vmatpush.msra.mxu1 %v184_v5 }
 0x132   :  { %239 = vmatmul.msk.f32.vlgmr.msra.gmra.mxu1 %vm142_vm0, %v188_v6 }
 0x1af   :  { %v215_v8 = vpop.f32.mrf.mxu1 }
 0x1b0   :  { %v216_v9 = vadd.f32 %v215_v8, %v193_v7 }
 0x1b2   :  { %218 = vst [vmem:[#allocation2] sm:$0xf] %v216_v9 }
 0x1b3   :  { %229 = dma.vmem_to_hbm [thread:$0]  %s225_s11, 64, %s227_s14, [#allocation3]  }
 0x1b4   :  { %284 = dma.done.wait [#allocation3], 64  }
 0x1b5   :  { %285 = vsyncadd [#allocation3], 4294967232 }
 0x1b6   :  { %234 = vsyncpa [#allocation3], 1 }

</bundles_post_ra>
